<compile_context>
chip_gen: v5e
topology: v5e:2x2
jax: 0.10.0
libtpu: 0.0.40
codegen_flags: <defaults>
</compile_context>

<pallas_src>
import functools
import math

import jax
import jax.numpy as jnp
from jax.experimental import pallas as pl
from jax.experimental.pallas import tpu as pltpu


def _round_up(a, b):
    return ((a + b - 1) // b) * b


def _highway_kernel(x_ref, w_ref, b_ref, o_ref, *, lane_width):
    x = x_ref[...]
    # Fused projection + gate matmul: (TM, Ev) @ (Ev, 2*Ev) on the MXU.
    # Operands in w_ref.dtype (bf16 by default), accumulation in f32.
    y = jnp.dot(x.astype(w_ref.dtype), w_ref[...],
                preferred_element_type=jnp.float32) + b_ref[...]
    proj = jnp.maximum(y[:, :lane_width], 0.0)       # ReLU(linear_layer(x))
    gate = jax.nn.sigmoid(y[:, lane_width:])         # sigmoid(linear_layer_2(x))
    xf = x.astype(jnp.float32)
    # Highway blend, rewritten as x + g*(p - x)  ==  g*p + (1-g)*x.
    o_ref[...] = (xf + gate * (proj - xf)).astype(o_ref.dtype)


def _fuse_params(w_proj, b_proj, w_gate, b_gate, pack, matmul_dtype):
    """Pre-transposed, lane-packed (block-diagonal) fused weights/biases."""
    wp_t = w_proj.T  # (E, E): kernel computes x @ W
    wg_t = w_gate.T
    if pack > 1:
        eye = jnp.eye(pack, dtype=wp_t.dtype)
        wp_t = jnp.kron(eye, wp_t)                   # (Ev, Ev) block-diagonal
        wg_t = jnp.kron(eye, wg_t)
        b_proj = jnp.tile(b_proj, (pack,))
        b_gate = jnp.tile(b_gate, (pack,))
    ev = wp_t.shape[0]
    w_cat = jnp.concatenate([wp_t, wg_t], axis=1).astype(matmul_dtype)   # (Ev, 2Ev)
    b_cat = jnp.concatenate([b_proj, b_gate]).astype(jnp.float32).reshape(1, 2 * ev)
    return w_cat, b_cat


class HighwayPallas:
    """Highway layer (ReLU proj + sigmoid gate) with fused weights built once."""

    def __init__(self, w_proj, b_proj, w_gate, b_gate, *,
                 matmul_dtype=jnp.bfloat16, block_rows=2048):
        self.embed_size = int(w_proj.shape[0])
        self.block_rows = int(block_rows)
        e = self.embed_size
        # Lane packing factor: P rows of width E become one 128-wide row.
        self.pack = 128 // e if (e < 128 and 128 % e == 0) else 1
        # Fused params built once (hoisted out of the per-call path).
        self.params = {1: _fuse_params(w_proj, b_proj, w_gate, b_gate, 1, matmul_dtype)}
        if self.pack > 1:
            self.params[self.pack] = _fuse_params(
                w_proj, b_proj, w_gate, b_gate, self.pack, matmul_dtype)

    def __call__(self, x):
        orig_shape = x.shape
        e = self.embed_size
        assert orig_shape[-1] == e, "last dim must equal embed_size_word"
        m = math.prod(orig_shape[:-1]) if len(orig_shape) > 1 else 1

        # Packed view when possible; otherwise fall back to P=1 (no padding).
        pack = self.pack if (m % self.pack == 0) else 1
        w_cat, b_cat = self.params[pack]
        ev = pack * e
        mv = m // pack                      # packed row count
        x_view = x.reshape(mv, ev)          # contiguous view, no data movement

        itemsize = x.dtype.itemsize
        if mv <= 8:
            tm = mv                         # single full block
        else:
            # >= 2 roughly even grid steps (v7x megacore), sublane multiple
            # of 8, capped at block_rows and by the scoped-VMEM budget
            # (double-buffered x + out tiles, plus resident fused weights).
            weight_bytes = 2 * (w_cat.size * w_cat.dtype.itemsize
                                + b_cat.size * b_cat.dtype.itemsize)
            row_bytes = 2 * (2 * ev * itemsize)          # x + out, double-buffered
            budget = 12 * 1024 * 1024 - weight_bytes     # under v5e's 16 MiB default
            tm_cap = max(8, (budget // max(row_bytes, 1)) // 8 * 8)
            tm = min(self.block_rows, _round_up(pl.cdiv(mv, 2), 8), tm_cap)
        grid = (pl.cdiv(mv, tm),)

        cost = pl.CostEstimate(
            flops=int(2 * mv * ev * (2 * ev) + 6 * m * e),
            transcendentals=int(m * e),
            bytes_accessed=int(2 * m * e * itemsize
                               + w_cat.size * w_cat.dtype.itemsize
                               + b_cat.size * b_cat.dtype.itemsize),
        )

        # NOTE(perf): for very large E, single-buffer the resident weight spec
        # (pipeline_mode=pl.Buffered(1)) and/or tile W_cat over K/N; not needed
        # at small E.  If DMA is exposed at small TM, bump x/out to Buffered(3).
        out_view = pl.pallas_call(
            functools.partial(_highway_kernel, lane_width=ev),
            out_shape=jax.ShapeDtypeStruct((mv, ev), x.dtype),
            grid=grid,
            in_specs=[
                pl.BlockSpec((tm, ev), lambda i: (i, 0)),      # x tile (pipelined)
                pl.BlockSpec((ev, 2 * ev), lambda i: (0, 0)),  # fused weights (resident)
                pl.BlockSpec((1, 2 * ev), lambda i: (0, 0)),   # fused biases  (resident)
            ],
            out_specs=pl.BlockSpec((tm, ev), lambda i: (i, 0)),
            compiler_params=pltpu.CompilerParams(
                dimension_semantics=("parallel",),
            ),
            cost_estimate=cost,
        )(x_view, w_cat, b_cat)

        return out_view.reshape(orig_shape)


def highway(x, w_proj, b_proj, w_gate, b_gate, **kwargs):
    """One-shot functional wrapper (builds fused weights on every call)."""
    return HighwayPallas(w_proj, b_proj, w_gate, b_gate, **kwargs)(x)


def highway_ref(x, w_proj, b_proj, w_gate, b_gate, matmul_dtype=None):
    """Pure-JAX reference.  matmul_dtype emulates reduced-precision operands."""
    if matmul_dtype is not None:
        xm = x.astype(matmul_dtype)
        wp = w_proj.astype(matmul_dtype)
        wg = w_gate.astype(matmul_dtype)
    else:
        xm, wp, wg = x, w_proj, w_gate
    y1 = jnp.dot(xm, wp.T, preferred_element_type=jnp.float32) + b_proj
    y2 = jnp.dot(xm, wg.T, preferred_element_type=jnp.float32) + b_gate
    x_proj = jnp.maximum(y1, 0.0)
    x_gate = jax.nn.sigmoid(y2)
    return x_gate * x_proj + (1.0 - x_gate) * x


if __name__ == "__main__":
    embed_size_word = 32

    key = jax.random.PRNGKey(0)
    kx, kw1, kb1, kw2, kb2 = jax.random.split(key, 5)

    # nn.Linear shapes: weight (out, in), bias (out,)
    w_proj = jax.random.normal(kw1, (embed_size_word, embed_size_word), jnp.float32) * 0.1
    b_proj = jax.random.normal(kb1, (embed_size_word,), jnp.float32) * 0.1
    w_gate = jax.random.normal(kw2, (embed_size_word, embed_size_word), jnp.float32) * 0.1
    b_gate = jax.random.normal(kb2, (embed_size_word,), jnp.float32) * 0.1

    # Fused weights built once; bf16 MXU operands by default (per perf review).
    layer = HighwayPallas(w_proj, b_proj, w_gate, b_gate)

    # Shapes: (a) small packed single-block, (b) ragged last grid block
    # (exercises masked block stores, no padding), (c) M % pack != 0 fallback.
    test_shapes = [(2, 8, embed_size_word),
                   (3, 100, embed_size_word),
                   (5, 7, embed_size_word)]
    for i, shape in enumerate(test_shapes):
        x = jax.random.normal(jax.random.fold_in(kx, i), shape, dtype=jnp.float32)
        out = layer(x)
        jax.block_until_ready(out)
        assert out.shape == x.shape
        # Tight check vs a reference with identically-rounded bf16 operands.
        ref_bf16 = highway_ref(x, w_proj, b_proj, w_gate, b_gate,
                               matmul_dtype=jnp.bfloat16)
        assert jnp.allclose(out, ref_bf16, atol=1e-3, rtol=1e-3), \
            f"mismatch vs bf16-operand reference at shape {shape}"
        # Sanity check vs the full-f32 reference (bf16 operand rounding only).
        ref_f32 = highway_ref(x, w_proj, b_proj, w_gate, b_gate)
        assert jnp.allclose(out, ref_f32, atol=1e-1, rtol=1e-1), \
            f"mismatch vs f32 reference at shape {shape}"

    # Exact-semantics check with f32 MXU operands (matches PyTorch numerics).
    layer_f32 = HighwayPallas(w_proj, b_proj, w_gate, b_gate,
                              matmul_dtype=jnp.float32)
    x = jax.random.normal(kx, (2, 8, embed_size_word), dtype=jnp.float32)
    out = layer_f32(x)
    jax.block_until_ready(out)
    ref = highway_ref(x, w_proj, b_proj, w_gate, b_gate)
    assert jnp.allclose(out, ref, atol=1e-5, rtol=1e-5), "f32 path mismatch"

    print("KERNEL_OK")
</pallas_src>

<mosaic_0001>
module attributes {stable_mosaic.version = 11 : i64} {
  func.func @_highway_kernel(%arg0: i32, %arg1: memref<4x128xf32, #tpu.memory_space<vmem>>, %arg2: memref<128x256xbf16, #tpu.memory_space<vmem>>, %arg3: memref<1x256xf32, #tpu.memory_space<vmem>>, %arg4: memref<4x128xf32, #tpu.memory_space<vmem>>) attributes {dimension_semantics = [#tpu.dimension_semantics<parallel>], iteration_bounds = array<i64: 1>, scalar_prefetch = 0 : i64, scratch_operands = 0 : i64, tpu.core_type = #tpu.core_type<tc>, window_params = [{transform_indices = @transform_0, window_bounds = array<i64: 4, 128>}, {pipeline_mode = #tpu.pipeline_mode<synchronous>, transform_indices = @transform_1, window_bounds = array<i64: 128, 256>}, {pipeline_mode = #tpu.pipeline_mode<synchronous>, transform_indices = @transform_2, window_bounds = array<i64: 1, 256>}, {transform_indices = @transform_3, window_bounds = array<i64: 4, 128>}]} {
    %c0 = arith.constant 0 : index
    %c0_0 = arith.constant 0 : index
    %0 = vector.load %arg1[%c0, %c0_0] : memref<4x128xf32, #tpu.memory_space<vmem>>, vector<4x128xf32>
    %1 = arith.truncf %0 : vector<4x128xf32> to vector<4x128xbf16>
    %c0_1 = arith.constant 0 : index
    %c0_2 = arith.constant 0 : index
    %2 = vector.load %arg2[%c0_1, %c0_2] : memref<128x256xbf16, #tpu.memory_space<vmem>>, vector<128x256xbf16>
    %cst = arith.constant dense<0.000000e+00> : vector<4x256xf32>
    %3 = tpu.matmul %1, %2, %cst {dimension_numbers = #tpu.dot_dimension_numbers<[1], [0], [0], [1], [0, 0, 1, 1], [], []>} : vector<4x128xbf16>, vector<128x256xbf16>, vector<4x256xf32> -> vector<4x256xf32>
    %c0_3 = arith.constant 0 : index
    %c0_4 = arith.constant 0 : index
    %4 = vector.load %arg3[%c0_3, %c0_4] : memref<1x256xf32, #tpu.memory_space<vmem>>, vector<1x256xf32>
    %5 = vector.broadcast %4 : vector<1x256xf32> to vector<4x256xf32>
    %6 = arith.addf %3, %5 : vector<4x256xf32>
    %7 = vector.extract_strided_slice %6 {offsets = [0, 0], sizes = [4, 128], strides = [1, 1]} : vector<4x256xf32> to vector<4x128xf32>
    %cst_5 = arith.constant 0.000000e+00 : f32
    %8 = vector.broadcast %cst_5 : f32 to vector<4x128xf32>
    %9 = arith.maximumf %7, %8 : vector<4x128xf32>
    %10 = vector.extract_strided_slice %6 {offsets = [0, 128], sizes = [4, 128], strides = [1, 1]} : vector<4x256xf32> to vector<4x128xf32>
    %11 = arith.negf %10 : vector<4x128xf32>
    %12 = math.exp %11 : vector<4x128xf32>
    %cst_6 = arith.constant 1.000000e+00 : f32
    %13 = vector.broadcast %cst_6 : f32 to vector<4x128xf32>
    %14 = arith.addf %13, %12 : vector<4x128xf32>
    %15 = arith.divf %13, %14 : vector<4x128xf32>
    %16 = arith.subf %9, %0 : vector<4x128xf32>
    %17 = arith.mulf %15, %16 : vector<4x128xf32>
    %18 = arith.addf %0, %17 : vector<4x128xf32>
    %c0_7 = arith.constant 0 : index
    %c0_8 = arith.constant 0 : index
    %19 = vector.load %arg4[%c0_7, %c0_8] : memref<4x128xf32, #tpu.memory_space<vmem>>, vector<4x128xf32>
    tpu.vector_store %arg4[%c0_7, %c0_8], %18 {strides = array<i32>} : memref<4x128xf32, #tpu.memory_space<vmem>>, vector<4x128xf32>,
    return
  }
  func.func @transform_0(%arg0: i32) -> (i32, i32) {
    %c0_i32 = arith.constant 0 : i32
    %c0_i32_0 = arith.constant 0 : i32
    return %arg0, %c0_i32 : i32, i32
  }
  func.func @transform_1(%arg0: i32) -> (i32, i32) {
    %c0_i32 = arith.constant 0 : i32
    %c0_i32_0 = arith.constant 0 : i32
    %c0_i32_1 = arith.constant 0 : i32
    return %c0_i32, %c0_i32_0 : i32, i32
  }
  func.func @transform_2(%arg0: i32) -> (i32, i32) {
    %c0_i32 = arith.constant 0 : i32
    %c0_i32_0 = arith.constant 0 : i32
    %c0_i32_1 = arith.constant 0 : i32
    return %c0_i32, %c0_i32_0 : i32, i32
  }
  func.func @transform_3(%arg0: i32) -> (i32, i32) {
    %c0_i32 = arith.constant 0 : i32
    %c0_i32_0 = arith.constant 0 : i32
    return %arg0, %c0_i32 : i32, i32
  }
}

</mosaic_0001>

<bundles_post_ra>
// kernel: tpu_custom_call.1
= control target key start
LH: loop header
LB: loop body
LE: loop exit
PB: predicated region body
PF: predicated region fallthrough
CT: control target
= control target key end

     0   :  { %8 = vsyncpa [#allocation3], 0  ;;  %s461_s0 = inlined_call_operand.hbm [shape: f32[4,128], index: 0, kind: input, shape index: {}]   ;;  %s462_s1 = inlined_call_operand.hbm [shape: bf16[128,256], index: 1, kind: input, shape index: {}]   ;;  %s463_s2 = inlined_call_operand.hbm [shape: f32[1,256], index: 2, kind: input, shape index: {}]   ;;  %s464_s3 = inlined_call_operand.hbm [shape: f32[4,128], index: 3, kind: output, shape index: {}]  }
   0x1   :  { %9 = vsyncpa [#allocation6], 0  ;;  %s26_s14 = sshll.u32 %s462_s1, 4  ;;  %s27_s14 = int_to_ptr.hbm [resolvable:$true] %s26_s14 }
   0x2   :  { %10 = vsyncpa [#allocation4], 0  ;;  %s423_s15 = smov [#allocation5]   ;;  %s16_s19 = sshll.u32 %s461_s0, 4  ;;  %s17_s19 = int_to_ptr.hbm [resolvable:$true] %s16_s19 }
   0x3   :  { %s28_s16 = sshll.u32 %s423_s15, 4  ;;  %s424_s20 = smov 128   ;;  %s29_s16 = int_to_ptr.vmem [resolvable:$true] %s28_s16 }
   0x4   :  { %s425_s21 = smov 8   ;;  %s426_s22 = smov [#allocation2]  }
   0x5   :  { %34 = dma.hbm_to_vmem [thread:$0]  %s27_s14, 2048, %s29_s16, [#allocation6], %s424_s20, %s424_s20, %s425_s21  }
   0x6   :  { %s18_s23 = sshll.u32 %s426_s22, 4  ;;  %s40_s26 = sshll.u32 %s463_s2, 4  ;;  %s19_s23 = int_to_ptr.vmem [resolvable:$true] %s18_s23  ;;  %s41_s26 = int_to_ptr.hbm [resolvable:$true] %s40_s26 }
   0x7   :  { %21 = dma.hbm_to_vmem [thread:$0]  %s17_s19, 64, %s19_s23, [#allocation3]  }
   0x8   :  { %s427_s1 = smov [#allocation7]  }
   0x9   :  { %s42_s27 = sshll.u32 %s427_s1, 4  ;;  %s43_s27 = int_to_ptr.vmem [resolvable:$true] %s42_s27 }
   0xa   :  { %45 = dma.hbm_to_vmem [thread:$0]  %s41_s26, 32, %s43_s27, [#allocation6]  }
   0xb   :  { %417 = dma.done.wait [#allocation3], 64  }
   0xc   :  { %418 = vsyncadd [#allocation3], 4294967232 }
   0xd   :  { %419 = dma.done.wait [#allocation6], 2080  }
   0xe   :  { %420 = vsyncadd [#allocation6], 4294965216  ;;  %v309_v0 = vld [vmem:[#allocation5 + $0x74] sm:$0xf]  ;;  %v290_v1 = vld [vmem:[#allocation5 + $0x78] sm:$0xf0] }
   0xf   :  { %v307_v2 = vld [vmem:[#allocation5 + $0x64] sm:$0xf]  ;;  %v293_v3 = vor.u32 %v309_v0, %v290_v1  ;;  %v282_v4 = vld [vmem:[#allocation5 + $0x68] sm:$0xf0]  ;;  %v288_v5 = vld [vmem:[#allocation5 + $0x70] sm:$0xf] }
  0x10   :  { %v285_v6 = vor.u32 %v307_v2, %v282_v4  ;;  %v305_v7 = vld [vmem:[#allocation5 + $0x54] sm:$0xf]  ;;  %v310_v8 = vld [vmem:[#allocation5 + $0x74] sm:$0xf0]  ;;  %v274_v9 = vld [vmem:[#allocation5 + $0x58] sm:$0xf0] }
  0x11   :  { %175 = vmatpush.bf16.msra.mxu1 %v293_v3  ;;  %v289_v10 = vor.u32 %v310_v8, %v288_v5  ;;  %v280_v11 = vld [vmem:[#allocation5 + $0x60] sm:$0xf]  ;;  %v308_v12 = vld [vmem:[#allocation5 + $0x64] sm:$0xf0]  ;;  %v277_v14 = vor.u32 %v305_v7, %v274_v9  ;;  %v272_v15 = vld [vmem:[#allocation5 + $0x50] sm:$0xf] }
  0x12   :  { %v281_v13 = vor.u32 %v308_v12, %v280_v11  ;;  %v306_v16 = vld [vmem:[#allocation5 + $0x54] sm:$0xf0]  ;;  %v303_v17 = vld [vmem:[#allocation5 + $0x44] sm:$0xf]  ;;  %v266_v18 = vld [vmem:[#allocation5 + $0x48] sm:$0xf0] }
  0x13   :  { %162 = vmatpush.bf16.msra.mxu0 %v289_v10  ;;  %v273_v19 = vor.u32 %v306_v16, %v272_v15  ;;  %v269_v20 = vor.u32 %v303_v17, %v266_v18  ;;  %v264_v21 = vld [vmem:[#allocation5 + $0x40] sm:$0xf]  ;;  %v304_v22 = vld [vmem:[#allocation5 + $0x44] sm:$0xf0]  ;;  %v301_v23 = vld [vmem:[#allocation5 + $0x34] sm:$0xf] }
  0x14   :  { %v258_v24 = vld [vmem:[#allocation5 + $0x38] sm:$0xf0]  ;;  %v265_v25 = vor.u32 %v304_v22, %v264_v21  ;;  %v256_v27 = vld [vmem:[#allocation5 + $0x30] sm:$0xf]  ;;  %v302_v28 = vld [vmem:[#allocation5 + $0x34] sm:$0xf0] }
  0x15   :  { %176 = vmatpush.bf16.msra.mxu1 %v285_v6  ;;  %v261_v26 = vor.u32 %v301_v23, %v258_v24  ;;  %v299_v29 = vld [vmem:[#allocation5 + $0x24] sm:$0xf]  ;;  %v250_v30 = vld [vmem:[#allocation5 + $0x28] sm:$0xf0]  ;;  %v257_v31 = vor.u32 %v302_v28, %v256_v27  ;;  %v248_v33 = vld [vmem:[#allocation5 + $0x20] sm:$0xf] }
  0x16   :  { %v253_v32 = vor.u32 %v299_v29, %v250_v30  ;;  %v300_v34 = vld [vmem:[#allocation5 + $0x24] sm:$0xf0]  ;;  %v297_v35 = vld [vmem:[#allocation5 + $0x14] sm:$0xf]  ;;  %v242_v36 = vld [vmem:[#allocation5 + $0x18] sm:$0xf0] }
  0x17   :  { %163 = vmatpush.bf16.msra.mxu0 %v281_v13  ;;  %v249_v37 = vor.u32 %v300_v34, %v248_v33  ;;  %v245_v38 = vor.u32 %v297_v35, %v242_v36  ;;  %v240_v39 = vld [vmem:[#allocation5 + $0x10] sm:$0xf]  ;;  %v298_v40 = vld [vmem:[#allocation5 + $0x14] sm:$0xf0]  ;;  %v295_v41 = vld [vmem:[#allocation5 + $0x4] sm:$0xf] }
  0x18   :  { %v234_v42 = vld [vmem:[#allocation5 + $0x8] sm:$0xf0]  ;;  %v241_v43 = vor.u32 %v298_v40, %v240_v39  ;;  %v58_v45 = vld [vmem:[#allocation2] sm:$0xf]  ;;  %v232_v46 = vld [vmem:[#allocation5] sm:$0xf] }
  0x19   :  { %177 = vmatpush.bf16.msra.mxu1 %v277_v14  ;;  %v237_v44 = vor.u32 %v295_v41, %v234_v42  ;;  %v296_v47 = vld [vmem:[#allocation5 + $0x4] sm:$0xf0]  ;;  %v59_v48 = vpack.c.bf16 %v58_v45, %v58_v45  ;;  %v76_v50 = vld [vmem:[#allocation7] sm:$0x3]  ;;  %s428_s0 = smov [#allocation8]   ;;  %s219_s30 = sshll.u32 %s464_s3, 4  ;;  %s220_s30 = int_to_ptr.hbm [resolvable:$true] %s219_s30 }
  0x1a   :  { %v233_v49 = vor.u32 %v296_v47, %v232_v46  ;;  %v79_v51 = vperm.slane %v76_v50, 1  ;;  %v78_v60 = vperm.slane %v76_v50, 0  ;;  %s217_s2 = sshll.u32 %s428_s0, 4  ;;  %s218_s2 = int_to_ptr.vmem [resolvable:$true] %s217_s2 }
  0x1b   :  { %164 = vmatpush.bf16.msra.mxu0 %v273_v19 }
  0x1d   :  { %178 = vmatpush.bf16.msra.mxu1 %v269_v20 }
  0x1f   :  { %165 = vmatpush.bf16.msra.mxu0 %v265_v25 }
  0x21   :  { %179 = vmatpush.bf16.msra.mxu1 %v261_v26 }
  0x23   :  { %166 = vmatpush.bf16.msra.mxu0 %v257_v31 }
  0x25   :  { %180 = vmatpush.bf16.msra.mxu1 %v253_v32 }
  0x27   :  { %167 = vmatpush.bf16.msra.mxu0 %v249_v37 }
  0x29   :  { %181 = vmatpush.bf16.msra.mxu1 %v245_v38 }
  0x2b   :  { %168 = vmatpush.bf16.msra.mxu0 %v241_v43 }
  0x2d   :  { %182 = vmatpush.bf16.msra.mxu1 %v237_v44 }
  0x2f   :  { %169 = vmatpush.bf16.msra.mxu0 %v233_v49 }
  0x30   :  { %183 = vmatmul.bf16.vlgmr.msra.gmra.mxu1 %v59_v48 }
  0x32   :  { %170 = vmatmul.bf16.vlgmr.msra.gmra.mxu0 %v59_v48 }
  0xad   :  { %v184_v52 = vpop.f32.mrf.mxu1 }
  0xae   :  { %v185_v53 = vadd.f32 %v184_v52, %v79_v51 }
  0xaf   :  { %v171_v55 = vpop.f32.mrf.mxu0 }
  0xb0   :  { %v294_v54 = vmul.f32 -1.442695, %v185_v53  ;;  %v172_v61 = vadd.f32 %v171_v55, %v78_v60 }
  0xb2   :  { %317 = vpow2.f32 %v294_v54  ;;  %v188_v1 = vmax.f32 %v172_v61, 0.0 }
  0xb4   :  { %v208_v6 = vsub.f32 %v188_v1, %v58_v45 }
  0xb5   :  { %v186_v56 = vpop.f32.mrf.mxu1 }
  0xb7   :  { %v173_v58 = vpop.f32.mrf.mxu0 }
  0xb8   :  { %v318_v57 = vpop.eup %317 }
  0xb9   :  { %v192_v59 = vadd.f32 1.0, %v318_v57 }
  0xbb   :  { %319 = vrcp.f32 %v192_v59  ;;  %v204_v2 = vand.u32 2147483648, %v192_v59  ;;  %v202_v4 = vand.u32 2147483647, %v192_v59  ;;  %vm198_vm1 = vweird.f32 %v192_v59 }
  0xbd   :  { %v205_v7 = vor.u32 1.1754944e-38, %v204_v2  ;;  %vm203_vm3 = vcmp.eq.f32.partialorder %v202_v4, 8.507059e+37 }
  0xc1   :  { %v320_v62 = vpop.eup %319 }
  0xc2   :  { %v194_v63 = vmul.f32 %v320_v62, %v192_v59  ;;  %vm199_vm0 = vweird.f32 %v320_v62 }
  0xc3   :  { %vm200_vm2 = vmor %vm198_vm1, %vm199_vm0 }
  0xc4   :  { %v195_v0 = vsub.f32 1.0, %v194_v63 }
  0xc6   :  { %v196_v3 = vmul.f32 %v320_v62, %v195_v0 }
  0xc8   :  { %v197_v5 = vadd.f32 %v320_v62, %v196_v3 }
  0xca   :  { %v201_v8 = vsel %vm200_vm2, %v320_v62, %v197_v5 }
  0xcb   :  { %v206_v9 = vsel %vm203_vm3, %v205_v7, %v201_v8 }
  0xcc   :  { %v209_v10 = vmul.f32 %v208_v6, %v206_v9 }
  0xce   :  { %v210_v11 = vadd.f32 %v209_v10, %v58_v45 }
  0xd0   :  { %211 = vst [vmem:[#allocation8] sm:$0xf] %v210_v11 }
  0xd1   :  { %222 = dma.vmem_to_hbm [thread:$0]  %s218_s2, 64, %s220_s30, [#allocation4]  }
  0xd2   :  { %421 = dma.done.wait [#allocation4], 64  }
  0xd3   :  { %422 = vsyncadd [#allocation4], 4294967232 }
  0xd4   :  { %227 = vsyncpa [#allocation3], 1 }
  0xd5   :  { %228 = vsyncpa [#allocation6], 1 }
  0xd6   :  { %229 = vsyncpa [#allocation4], 1 }

</bundles_post_ra>
